<compile_context>
chip_gen: v5e
topology: v5e:2x2
jax: 0.10.0
libtpu: 0.0.40
codegen_flags: <defaults>
</compile_context>

<pallas_src>
import math

import numpy as np
import jax
import jax.numpy as jnp
from jax import lax
from jax.experimental import pallas as pl
from jax.experimental.pallas import tpu as pltpu


def _gaussian_taps_1d(kernel_size: int, sigma: float):
    """Normalized 1-D Gaussian taps as Python floats (baked into the kernel body).

    outer(g,g)/sum(outer) == outer(g/sum, g/sum): applying the normalized 1-D taps in
    each pass reproduces the module's normalized 2-D kernel exactly.
    """
    coords = np.arange(kernel_size, dtype=np.float64)
    mean = (kernel_size - 1) / 2.0
    g = np.exp(-(((coords - mean) / sigma) ** 2) / 2.0)
    g = g / g.sum()
    return tuple(float(t) for t in g)


def make_gaussian_weight(channels: int, kernel_size: int, sigma: float, dtype=jnp.float32):
    """Mirrors GaussianSmoothing.__init__ for dim=2: (C, K, K) taps, identical per channel."""
    coords = jnp.arange(kernel_size, dtype=jnp.float32)
    mean = (kernel_size - 1) / 2.0
    g1d = (1.0 / (sigma * math.sqrt(2.0 * math.pi))) * jnp.exp(
        -(((coords - mean) / sigma) ** 2) / 2.0)
    k2d = jnp.outer(g1d, g1d)
    k2d = k2d / jnp.sum(k2d)
    return jnp.broadcast_to(k2d, (channels, kernel_size, kernel_size)).astype(dtype)


def _make_kernel(taps, rows: int, lanes: int):
    """Separable blur on one resident (rows, lanes) tile; f32 math (safe on v5e)."""
    k = len(taps)

    def sep_pass(v, size, axis):
        # Shifted views via XLU roll; symmetric taps pair two shifts per multiply.
        def shifted(j):
            return v if j == 0 else pltpu.roll(v, shift=size - j, axis=axis)

        acc = None
        for j in range(k // 2):
            term = jnp.float32(taps[j]) * (shifted(j) + shifted(k - 1 - j))
            acc = term if acc is None else acc + term
        if k % 2 == 1:
            m = k // 2
            term = jnp.float32(taps[m]) * shifted(m)
            acc = term if acc is None else acc + term
        return acc

    def kernel(x_ref, o_ref):
        x = x_ref[...].astype(jnp.float32)
        tmp = sep_pass(x, lanes, axis=1)   # horizontal pass (lanes / W)
        acc = sep_pass(tmp, rows, axis=0)  # vertical pass (sublanes / H)
        # Dense store of the full padded slab; the wrapper crops the valid window.
        o_ref[...] = acc.astype(o_ref.dtype)

    return kernel


def _vmem_plan():
    """Per-generation (block byte budget, base vmem_limit_bytes, hard scoped-VMEM cap)."""
    try:
        kind = jax.devices()[0].device_kind.lower()
    except Exception:
        kind = ""
    if "v5" in kind:          # v5e: slow HBM, 2 MiB block already near the roofline knee
        return 2 << 20, 32 << 20, 100 << 20
    if "v6" in kind:          # v6e: 128 MiB physical VMEM, bigger blocks help a little
        return 4 << 20, 40 << 20, 100 << 20
    # v7x (64 MiB VMEM/TC) or unknown: bigger blocks for the fast HBM, conservative caps.
    return 4 << 20, 48 << 20, 56 << 20


def _choose_group(p, plane_elems, itemsize, budget_bytes, cap_bytes, legal):
    """Pick planes-per-block g (dividing p): legal layout, block under the byte budget,
    and a grid of >= 4 steps when possible (megacore sharding + DMA pipelining)."""
    cands = [g for g in range(1, p + 1) if p % g == 0 and legal(g)]
    max_grid = max(p // g for g in cands)
    floor = min(4, max_grid)
    cands = [g for g in cands if p // g >= floor]

    def block_bytes(g):
        return g * plane_elems * itemsize

    def footprint_bytes(g):
        # 2x input + 2x output double buffers (input dtype) + ~3 live f32 temporaries.
        return g * plane_elems * (4 * itemsize + 3 * 4)

    fits = [g for g in cands if block_bytes(g) <= budget_bytes]
    g = max(fits) if fits else min(cands)
    if footprint_bytes(g) > cap_bytes:
        # TODO(synk): halo'd row-strip tiling (manual DMA, (K-1)-row overlap) for planes
        # whose full height does not fit VMEM; not needed for the shapes exercised here.
        raise NotImplementedError(
            "GaussianSmoothing pallas kernel: single plane too large for VMEM tiling")
    return g, footprint_bytes(g)


def gaussian_smoothing(x, kernel_size: int, sigma: float):
    """Depthwise 'valid' Gaussian blur of x:(N,C,H,W). Returns (N,C,H-K+1,W-K+1), dtype of x."""
    n, c, h, w = x.shape
    k = int(kernel_size)
    if h < k or w < k:
        raise ValueError("spatial dims must be >= kernel_size for 'valid' convolution")
    ho, wo = h - k + 1, w - k + 1
    p = n * c
    itemsize = np.dtype(x.dtype).itemsize
    taps = _gaussian_taps_1d(k, float(sigma))
    budget, base_limit, cap = _vmem_plan()
    plane_elems = h * w
    total_elems = p * plane_elems
    cost = pl.CostEstimate(flops=2 * (2 * k - 1) * total_elems,
                           transcendentals=0,
                           bytes_accessed=2 * total_elems * itemsize)

    if w >= 128:
        # Fast path: transpose-free layout (P*H, W). Pure view in, slice-only crop out.
        g, footprint = _choose_group(p, plane_elems, itemsize, budget, cap,
                                     legal=lambda gg: (gg * h) % 8 == 0 or gg == p)
        rows, lanes = g * h, w
        limit = min(cap, max(base_limit, footprint + (2 << 20)))
        out_packed = pl.pallas_call(
            _make_kernel(taps, rows, lanes),
            out_shape=jax.ShapeDtypeStruct((p * h, w), x.dtype),
            grid=(p // g,),
            in_specs=[pl.BlockSpec((rows, lanes), lambda i: (i, 0))],
            out_specs=pl.BlockSpec((rows, lanes), lambda i: (i, 0)),
            compiler_params=pltpu.CompilerParams(
                dimension_semantics=("parallel",), vmem_limit_bytes=limit),
            cost_estimate=cost,
        )(x.reshape(p * h, w))
        return out_packed.reshape(n, c, h, w)[:, :, :ho, :wo]

    # Small-W path: pack planes along the lane axis, (N,C,H,W) -> (H, P*W), for
    # lane-dense vregs and unmasked stores.
    g, footprint = _choose_group(p, plane_elems, itemsize, budget, cap,
                                 legal=lambda gg: (gg * w) % 128 == 0 or gg == p)
    rows, lanes = h, g * w
    limit = min(cap, max(base_limit, footprint + (2 << 20)))
    xp = jnp.transpose(x.reshape(p, h, w), (1, 0, 2)).reshape(h, p * w)
    out_packed = pl.pallas_call(
        _make_kernel(taps, rows, lanes),
        out_shape=jax.ShapeDtypeStruct((h, p * w), x.dtype),
        grid=(p // g,),
        in_specs=[pl.BlockSpec((rows, lanes), lambda i: (0, i))],
        out_specs=pl.BlockSpec((rows, lanes), lambda i: (0, i)),
        compiler_params=pltpu.CompilerParams(
            dimension_semantics=("parallel",), vmem_limit_bytes=limit),
        cost_estimate=cost,
    )(xp)
    out = out_packed[:ho].reshape(ho, p, w)[:, :, :wo]
    return jnp.transpose(out, (1, 0, 2)).reshape(n, c, ho, wo)


def _reference(x, weight):
    # lax depthwise conv reference: weight (C,1,K,K) OIHW, feature_group_count=C, VALID padding.
    ch = weight.shape[0]
    w4 = weight[:, None, :, :]
    return lax.conv_general_dilated(
        x, w4, window_strides=(1, 1), padding="VALID",
        dimension_numbers=("NCHW", "OIHW", "NCHW"),
        feature_group_count=ch)


if __name__ == "__main__":
    # Module config: GaussianSmoothing(channels=4, kernel_size=3, sigma=1.0, dim=2)
    channels, kernel_size, sigma = 4, 3, 1.0
    batch, spatial = 2, 16

    key = jax.random.PRNGKey(0)
    x = jax.random.normal(key, (batch, channels, spatial, spatial), dtype=jnp.float32)

    out = jax.block_until_ready(gaussian_smoothing(x, kernel_size, sigma))
    ref = jax.block_until_ready(_reference(x, make_gaussian_weight(channels, kernel_size, sigma)))
    assert out.shape == (batch, channels, spatial - kernel_size + 1, spatial - kernel_size + 1)
    assert jnp.allclose(out, ref, atol=1e-5, rtol=1e-5), "mismatch (small-W lane-packed path)"

    # Also exercise the transpose-free fast path (W >= 128).
    x2 = jax.random.normal(jax.random.PRNGKey(0), (1, 3, 32, 128), dtype=jnp.float32)
    out2 = jax.block_until_ready(gaussian_smoothing(x2, kernel_size, sigma))
    ref2 = jax.block_until_ready(_reference(x2, make_gaussian_weight(3, kernel_size, sigma)))
    assert out2.shape == (1, 3, 30, 126)
    assert jnp.allclose(out2, ref2, atol=1e-5, rtol=1e-5), "mismatch (transpose-free path)"

    print("KERNEL_OK")
</pallas_src>

<mosaic_0001>
module attributes {stable_mosaic.version = 11 : i64} {
  func.func @kernel(%arg0: i32, %arg1: memref<16x128xf32, #tpu.memory_space<vmem>>, %arg2: memref<16x128xf32, #tpu.memory_space<vmem>>) attributes {dimension_semantics = [#tpu.dimension_semantics<parallel>], iteration_bounds = array<i64: 1>, scalar_prefetch = 0 : i64, scratch_operands = 0 : i64, tpu.core_type = #tpu.core_type<tc>, window_params = [{transform_indices = @transform_0, window_bounds = array<i64: 16, 128>}, {transform_indices = @transform_1, window_bounds = array<i64: 16, 128>}]} {
    %c0 = arith.constant 0 : index
    %c0_0 = arith.constant 0 : index
    %0 = vector.load %arg1[%c0, %c0_0] : memref<16x128xf32, #tpu.memory_space<vmem>>, vector<16x128xf32>
    %c126_i32 = arith.constant 126 : i32
    %1 = tpu.dynamic_rotate %0 by %c126_i32 dim 1 : vector<16x128xf32>, i32 -> vector<16x128xf32>
    %2 = arith.addf %0, %1 : vector<16x128xf32>
    %cst = arith.constant 0.274068624 : f32
    %3 = vector.broadcast %cst : f32 to vector<16x128xf32>
    %4 = arith.mulf %3, %2 : vector<16x128xf32>
    %c127_i32 = arith.constant 127 : i32
    %5 = tpu.dynamic_rotate %0 by %c127_i32 dim 1 : vector<16x128xf32>, i32 -> vector<16x128xf32>
    %cst_1 = arith.constant 0.451862752 : f32
    %6 = vector.broadcast %cst_1 : f32 to vector<16x128xf32>
    %7 = arith.mulf %6, %5 : vector<16x128xf32>
    %8 = arith.addf %4, %7 : vector<16x128xf32>
    %c14_i32 = arith.constant 14 : i32
    %9 = tpu.dynamic_rotate %8 by %c14_i32 dim 0 : vector<16x128xf32>, i32 -> vector<16x128xf32>
    %10 = arith.addf %8, %9 : vector<16x128xf32>
    %cst_2 = arith.constant 0.274068624 : f32
    %11 = vector.broadcast %cst_2 : f32 to vector<16x128xf32>
    %12 = arith.mulf %11, %10 : vector<16x128xf32>
    %c15_i32 = arith.constant 15 : i32
    %13 = tpu.dynamic_rotate %8 by %c15_i32 dim 0 : vector<16x128xf32>, i32 -> vector<16x128xf32>
    %cst_3 = arith.constant 0.451862752 : f32
    %14 = vector.broadcast %cst_3 : f32 to vector<16x128xf32>
    %15 = arith.mulf %14, %13 : vector<16x128xf32>
    %16 = arith.addf %12, %15 : vector<16x128xf32>
    %c0_4 = arith.constant 0 : index
    %c0_5 = arith.constant 0 : index
    %17 = vector.load %arg2[%c0_4, %c0_5] : memref<16x128xf32, #tpu.memory_space<vmem>>, vector<16x128xf32>
    tpu.vector_store %arg2[%c0_4, %c0_5], %16 {strides = array<i32>} : memref<16x128xf32, #tpu.memory_space<vmem>>, vector<16x128xf32>,
    return
  }
  func.func @transform_0(%arg0: i32) -> (i32, i32) {
    %c0_i32 = arith.constant 0 : i32
    %c0_i32_0 = arith.constant 0 : i32
    return %c0_i32, %arg0 : i32, i32
  }
  func.func @transform_1(%arg0: i32) -> (i32, i32) {
    %c0_i32 = arith.constant 0 : i32
    %c0_i32_0 = arith.constant 0 : i32
    return %c0_i32, %arg0 : i32, i32
  }
}

</mosaic_0001>

<bundles_post_ra>
// kernel: tpu_custom_call.1
= control target key start
LH: loop header
LB: loop body
LE: loop exit
PB: predicated region body
PF: predicated region fallthrough
CT: control target
= control target key end

     0   :  { %6 = vsyncpa [#allocation3], 0  ;;  %s170_s0 = inlined_call_operand.hbm [shape: f32[16,128], index: 0, kind: input, shape index: {}]   ;;  %s171_s1 = inlined_call_operand.hbm [shape: f32[16,128], index: 1, kind: output, shape index: {}]  }
   0x1   :  { %7 = vsyncpa [#allocation4], 0  ;;  %s12_s8 = sshll.u32 %s170_s0, 4  ;;  %s142_s9 = smov [#allocation2]   ;;  %s13_s8 = int_to_ptr.hbm [resolvable:$true] %s12_s8 }
   0x2   :  { %s14_s10 = sshll.u32 %s142_s9, 4  ;;  %s143_s11 = smov 128   ;;  %s15_s10 = int_to_ptr.vmem [resolvable:$true] %s14_s10 }
   0x3   :  { %s144_s12 = smov 8  }
   0x4   :  { %20 = dma.hbm_to_vmem [thread:$0]  %s13_s8, 256, %s15_s10, [#allocation3], %s143_s11, %s143_s11, %s144_s12  }
   0x5   :  { %138 = dma.done.wait [#allocation3], 256  }
   0x6   :  { %139 = vsyncadd [#allocation3], 4294967040  ;;  %v25_v0 = vld [vmem:[#allocation2] sm:$0xff]  ;;  %s145_s13 = smov 126   ;;  %s146_s14 = smov 127   ;;  %v26_v1 = vld [vmem:[#allocation2 + $0x8] sm:$0xff]  ;;  %v45_v5 = vlaneseq }
   0x7   :  { %27 = vrot.lane.b32.xlu0 %v25_v0, %s145_s13  ;;  %35 = vrot.lane.b32.xlu1 %v25_v0, %s146_s14  ;;  %s147_s0 = smov [#allocation5]   ;;  %s71_s18 = sshll.u32 %s171_s1, 4  ;;  %s72_s18 = int_to_ptr.hbm [resolvable:$true] %s71_s18 }
   0x8   :  { %v46_v12 = vshrl.u32 %v45_v5, 7  ;;  %s69_s15 = sshll.u32 %s147_s0, 4  ;;  %s70_s15 = int_to_ptr.vmem [resolvable:$true] %s69_s15 }
   0xa   :  { %vm47_vm0 = vcmp.lt.s32.totalorder %v46_v12, 6  ;;  %vm56_vm1 = vcmp.lt.s32.totalorder %v46_v12, 7 }
   0xf   :  { %29 = vrot.lane.b32.xlu0 %v26_v1, %s145_s13  ;;  %37 = vrot.lane.b32.xlu1 %v26_v1, %s146_s14 }
  0x79   :  { %v28_v2 = vpop.permute.xlu0 %27  ;;  %v36_v3 = vpop.permute.xlu1 %35 }
  0x7a   :  { %v31_v4 = vadd.f32 %v28_v2, %v25_v0  ;;  %v39_v7 = vmul.f32 0.45186275, %v36_v3 }
  0x7c   :  { %v33_v6 = vmul.f32 0.27406862, %v31_v4 }
  0x7e   :  { %v41_v13 = vadd.f32 %v39_v7, %v33_v6 }
  0x80   :  { %v43_v16 = vrot.slane %v41_v13, 2  ;;  %v54_v17 = vrot.slane %v41_v13, 1 }
  0x81   :  { %v30_v8 = vpop.permute.xlu0 %29  ;;  %v38_v9 = vpop.permute.xlu1 %37 }
  0x82   :  { %v32_v10 = vadd.f32 %v30_v8, %v26_v1  ;;  %v40_v11 = vmul.f32 0.45186275, %v38_v9 }
  0x84   :  { %v34_v14 = vmul.f32 0.27406862, %v32_v10 }
  0x86   :  { %v42_v15 = vadd.f32 %v40_v11, %v34_v14 }
  0x88   :  { %v44_v18 = vrot.slane %v42_v15, 2  ;;  %v55_v19 = vrot.slane %v42_v15, 1 }
  0x8a   :  { %v48_v20 = vsel %vm47_vm0, %v43_v16, %v44_v18  ;;  %v49_v21 = vsel %vm47_vm0, %v44_v18, %v43_v16  ;;  %v57_v22 = vsel %vm56_vm1, %v54_v17, %v55_v19  ;;  %v58_v23 = vsel %vm56_vm1, %v55_v19, %v54_v17 }
  0x8b   :  { %v51_v24 = vadd.f32 %v49_v21, %v42_v15  ;;  %v50_v25 = vadd.f32 %v48_v20, %v41_v13  ;;  %v59_v26 = vmul.f32 0.45186275, %v57_v22  ;;  %v60_v29 = vmul.f32 0.45186275, %v58_v23 }
  0x8d   :  { %v53_v27 = vmul.f32 0.27406862, %v51_v24  ;;  %v52_v28 = vmul.f32 0.27406862, %v50_v25 }
  0x8f   :  { %v61_v30 = vadd.f32 %v59_v26, %v52_v28  ;;  %v62_v31 = vadd.f32 %v60_v29, %v53_v27 }
  0x91   :  { %63 = vst [vmem:[#allocation5] sm:$0xff] %v61_v30 }
  0x92   :  { %64 = vst [vmem:[#allocation5 + $0x8] sm:$0xff] %v62_v31 }
  0x93   :  { %77 = dma.vmem_to_hbm [thread:$0]  %s70_s15, 256, %s72_s18, [#allocation4], %s143_s11, %s143_s11, %s144_s12  }
  0x94   :  { %140 = dma.done.wait [#allocation4], 256  }
  0x95   :  { %141 = vsyncadd [#allocation4], 4294967040 }
  0x96   :  { %82 = vsyncpa [#allocation3], 1 }
  0x97   :  { %83 = vsyncpa [#allocation4], 1 }

</bundles_post_ra>
